<compile_context>
chip_gen: v7x
topology: tpu7x:2x2x1
jax: 0.10.0
libtpu: 0.0.40
codegen_flags: <defaults>
</compile_context>

<pallas_src>
import jax
import jax.numpy as jnp
from jax.experimental import pallas as pl
from jax.experimental.pallas import tpu as pltpu

HIDDEN = 32
BATCH = 8          # one BatchNorm batch (never split across the grid)
N_GROUPS = 4       # independent BN batches folded into one launch
EPS = 1e-5
N_BLOCKS = 4       # number of Linear+BN+ReLU blocks
PARAM_ROWS = 16    # packed-param slab rows (sublane-aligned: 2 x 8)


def domain_classifier_kernel(x_ref, w_ref, p_ref, o_ref):
    # x_ref: (B, H)      VMEM   one BN batch (one grid step)
    # w_ref: (4, H, H)   VMEM   stacked hidden Linear weights, stored (in, out)
    # p_ref: (16, H)     VMEM   rows 0-3 gamma, 4-7 beta, 8 w5 row, 9 b5 broadcast
    # o_ref: (B, 1)      VMEM
    h = x_ref[...].astype(jnp.float32)
    inv_b = jnp.float32(1.0 / h.shape[0])

    for i in range(N_BLOCKS):  # static unroll: full LLO scheduler visibility
        w = w_ref[i]                                   # (H, H)
        gamma = p_ref[i:i + 1, :]                      # (1, H)
        beta = p_ref[N_BLOCKS + i:N_BLOCKS + i + 1, :]  # (1, H)

        # Linear (hidden bias omitted: it cancels against the BN mean subtraction).
        h = jnp.dot(h, w, preferred_element_type=jnp.float32)

        # BatchNorm1d (training mode, biased variance): single fused cross-sublane
        # reduction over [h | h*h] (2H = 64 lanes, one vreg), constants folded in,
        # affine folded into one scale/shift FMA, fused with ReLU.
        hh = jnp.concatenate([h, h * h], axis=-1)       # (B, 2H)
        s = jnp.sum(hh, axis=0, keepdims=True)          # (1, 2H)
        mean = s[:, :HIDDEN] * inv_b                    # (1, H)
        var = jnp.maximum(s[:, HIDDEN:] * inv_b - mean * mean, 0.0)
        scale = gamma * jax.lax.rsqrt(var + EPS)        # (1, H)
        shift = beta - mean * scale                     # (1, H)
        h = jnp.maximum(h * scale + shift, 0.0)

    # Final Linear(hidden, 1): VPU multiply + lane (XLU) reduction; 1-wide result
    # stays off the MXU.  b5 lives broadcast in row 9 of the param slab.
    w5 = p_ref[2 * N_BLOCKS:2 * N_BLOCKS + 1, :]        # (1, H)
    b5 = p_ref[2 * N_BLOCKS + 1:2 * N_BLOCKS + 2, 0:1]  # (1, 1)
    out = jnp.sum(h * w5, axis=-1, keepdims=True) + b5
    o_ref[...] = out.astype(o_ref.dtype)


def domain_classifier(x, w_stack, param_slab, *, batch=BATCH):
    total, H = x.shape
    assert total % batch == 0
    n_groups = total // batch
    return pl.pallas_call(
        domain_classifier_kernel,
        out_shape=jax.ShapeDtypeStruct((total, 1), jnp.float32),
        grid_spec=pltpu.PrefetchScalarGridSpec(
            num_scalar_prefetch=0,
            grid=(n_groups,),
            in_specs=[
                pl.BlockSpec((batch, H), lambda g: (g, 0)),
                pl.BlockSpec((N_BLOCKS, H, H), lambda g: (0, 0, 0)),
                pl.BlockSpec((PARAM_ROWS, H), lambda g: (0, 0)),
            ],
            out_specs=pl.BlockSpec((batch, 1), lambda g: (g, 0)),
        ),
        compiler_params=pltpu.CompilerParams(
            dimension_semantics=("parallel",)),  # engages v7x's 2nd TC; free elsewhere
    )(x, w_stack, param_slab)


def init_params(key, hidden):
    ks = jax.random.split(key, 4)
    # Linear weights stored as (in, out); scale ~ 1/sqrt(fan_in) like PyTorch default.
    scale = 1.0 / jnp.sqrt(jnp.float32(hidden))
    w_stack = jax.random.uniform(ks[0], (N_BLOCKS, hidden, hidden),
                                 jnp.float32, -scale, scale)
    b_stack = jax.random.uniform(ks[1], (N_BLOCKS, hidden),
                                 jnp.float32, -scale, scale)
    gamma_stack = jnp.ones((N_BLOCKS, hidden), jnp.float32)
    beta_stack = jnp.zeros((N_BLOCKS, hidden), jnp.float32)
    w5 = jax.random.uniform(ks[2], (hidden, 1), jnp.float32, -scale, scale)
    b5 = jax.random.uniform(ks[3], (), jnp.float32, -scale, scale)
    return w_stack, b_stack, gamma_stack, beta_stack, w5, b5


def pack_param_slab(gamma_stack, beta_stack, w5, b5, hidden):
    # One dense (16, H) f32 slab: rows 0-3 gamma, 4-7 beta, 8 w5 row, 9 b5 broadcast.
    slab = jnp.zeros((PARAM_ROWS, hidden), jnp.float32)
    slab = slab.at[0:N_BLOCKS].set(gamma_stack)
    slab = slab.at[N_BLOCKS:2 * N_BLOCKS].set(beta_stack)
    slab = slab.at[2 * N_BLOCKS].set(w5[:, 0])
    slab = slab.at[2 * N_BLOCKS + 1].set(jnp.full((hidden,), b5, jnp.float32))
    return slab


def reference(x, w_stack, b_stack, gamma_stack, beta_stack, w5, b5, batch):
    # Faithful PyTorch-semantics reference, evaluated per independent BN batch.
    # (Keeps the hidden Linear biases; BN in training mode, biased variance.)
    outs = []
    for g in range(x.shape[0] // batch):
        h = x[g * batch:(g + 1) * batch].astype(jnp.float32)
        for i in range(N_BLOCKS):
            h = h @ w_stack[i] + b_stack[i][None, :]
            mean = jnp.mean(h, axis=0, keepdims=True)
            var = jnp.mean((h - mean) ** 2, axis=0, keepdims=True)
            h = (h - mean) / jnp.sqrt(var + EPS)
            h = h * gamma_stack[i][None, :] + beta_stack[i][None, :]
            h = jnp.maximum(h, 0.0)
        outs.append(h @ w5 + b5)
    return jnp.concatenate(outs, axis=0)


if __name__ == "__main__":
    key = jax.random.PRNGKey(0)
    k_x, k_p = jax.random.split(key)

    # N_GROUPS independent BN batches of BATCH rows each, one kernel launch total.
    x = jax.random.normal(k_x, (N_GROUPS * BATCH, HIDDEN), jnp.float32)
    w_stack, b_stack, gamma_stack, beta_stack, w5, b5 = init_params(k_p, HIDDEN)
    param_slab = pack_param_slab(gamma_stack, beta_stack, w5, b5, HIDDEN)

    out = domain_classifier(x, w_stack, param_slab, batch=BATCH)
    out = jax.block_until_ready(out)

    ref = reference(x, w_stack, b_stack, gamma_stack, beta_stack, w5, b5, BATCH)
    assert out.shape == (N_GROUPS * BATCH, 1), out.shape
    assert jnp.allclose(out, ref, atol=1e-4, rtol=1e-4), (out, ref)

    print("KERNEL_OK")
</pallas_src>

<mosaic_0001>
module attributes {stable_mosaic.version = 11 : i64} {
  func.func @domain_classifier_kernel(%arg0: i32, %arg1: memref<8x32xf32, #tpu.memory_space<vmem>>, %arg2: memref<4x32x32xf32, #tpu.memory_space<vmem>>, %arg3: memref<16x32xf32, #tpu.memory_space<vmem>>, %arg4: memref<8x1xf32, #tpu.memory_space<vmem>>) attributes {dimension_semantics = [#tpu.dimension_semantics<parallel>], iteration_bounds = array<i64: 4>, scalar_prefetch = 0 : i64, scratch_operands = 0 : i64, tpu.core_type = #tpu.core_type<tc>, window_params = [{transform_indices = @transform_0, window_bounds = array<i64: 8, 32>}, {pipeline_mode = #tpu.pipeline_mode<synchronous>, transform_indices = @transform_1, window_bounds = array<i64: 4, 32, 32>}, {pipeline_mode = #tpu.pipeline_mode<synchronous>, transform_indices = @transform_2, window_bounds = array<i64: 16, 32>}, {transform_indices = @transform_3, window_bounds = array<i64: 8, 1>}]} {
    %c0 = arith.constant 0 : index
    %c0_0 = arith.constant 0 : index
    %0 = vector.load %arg1[%c0, %c0_0] : memref<8x32xf32, #tpu.memory_space<vmem>>, vector<8x32xf32>
    %c0_1 = arith.constant 0 : index
    %c0_2 = arith.constant 0 : index
    %c0_3 = arith.constant 0 : index
    %1 = vector.load %arg2[%c0_1, %c0_2, %c0_3] : memref<4x32x32xf32, #tpu.memory_space<vmem>>, vector<1x32x32xf32>
    %2 = vector.shape_cast %1 : vector<1x32x32xf32> to vector<32x32xf32>
    %c0_4 = arith.constant 0 : index
    %c0_5 = arith.constant 0 : index
    %3 = vector.load %arg3[%c0_4, %c0_5] : memref<16x32xf32, #tpu.memory_space<vmem>>, vector<1x32xf32>
    %c4 = arith.constant 4 : index
    %c0_6 = arith.constant 0 : index
    %4 = vector.load %arg3[%c4, %c0_6] : memref<16x32xf32, #tpu.memory_space<vmem>>, vector<1x32xf32>
    %cst = arith.constant dense<0.000000e+00> : vector<8x32xf32>
    %5 = tpu.matmul %0, %2, %cst {dimension_numbers = #tpu.dot_dimension_numbers<[1], [0], [0], [1], [0, 0, 1, 1], [], []>} : vector<8x32xf32>, vector<32x32xf32>, vector<8x32xf32> -> vector<8x32xf32>
    %6 = arith.mulf %5, %5 : vector<8x32xf32>
    %7 = tpu.concatenate %5, %6 in 1 : vector<8x32xf32>, vector<8x32xf32> -> vector<8x64xf32>
    %cst_7 = arith.constant dense<0.000000e+00> : vector<64xf32>
    %8 = vector.multi_reduction <add>, %7, %cst_7 [0] : vector<8x64xf32> to vector<64xf32>
    %9 = vector.shape_cast %8 : vector<64xf32> to vector<1x64xf32>
    %10 = vector.extract_strided_slice %9 {offsets = [0, 0], sizes = [1, 32], strides = [1, 1]} : vector<1x64xf32> to vector<1x32xf32>
    %cst_8 = arith.constant 1.250000e-01 : f32
    %11 = vector.broadcast %cst_8 : f32 to vector<1x32xf32>
    %12 = arith.mulf %10, %11 : vector<1x32xf32>
    %13 = vector.extract_strided_slice %9 {offsets = [0, 32], sizes = [1, 32], strides = [1, 1]} : vector<1x64xf32> to vector<1x32xf32>
    %cst_9 = arith.constant 1.250000e-01 : f32
    %14 = vector.broadcast %cst_9 : f32 to vector<1x32xf32>
    %15 = arith.mulf %13, %14 : vector<1x32xf32>
    %16 = arith.mulf %12, %12 : vector<1x32xf32>
    %17 = arith.subf %15, %16 : vector<1x32xf32>
    %cst_10 = arith.constant 0.000000e+00 : f32
    %18 = vector.broadcast %cst_10 : f32 to vector<1x32xf32>
    %19 = arith.maximumf %17, %18 : vector<1x32xf32>
    %cst_11 = arith.constant 9.99999974E-6 : f32
    %20 = vector.broadcast %cst_11 : f32 to vector<1x32xf32>
    %21 = arith.addf %19, %20 : vector<1x32xf32>
    %22 = math.rsqrt %21 : vector<1x32xf32>
    %23 = arith.mulf %3, %22 : vector<1x32xf32>
    %24 = arith.mulf %12, %23 : vector<1x32xf32>
    %25 = arith.subf %4, %24 : vector<1x32xf32>
    %26 = vector.broadcast %23 : vector<1x32xf32> to vector<8x32xf32>
    %27 = arith.mulf %5, %26 : vector<8x32xf32>
    %28 = vector.broadcast %25 : vector<1x32xf32> to vector<8x32xf32>
    %29 = arith.addf %27, %28 : vector<8x32xf32>
    %cst_12 = arith.constant 0.000000e+00 : f32
    %30 = vector.broadcast %cst_12 : f32 to vector<8x32xf32>
    %31 = arith.maximumf %29, %30 : vector<8x32xf32>
    %c1 = arith.constant 1 : index
    %c0_13 = arith.constant 0 : index
    %c0_14 = arith.constant 0 : index
    %32 = vector.load %arg2[%c1, %c0_13, %c0_14] : memref<4x32x32xf32, #tpu.memory_space<vmem>>, vector<1x32x32xf32>
    %33 = vector.shape_cast %32 : vector<1x32x32xf32> to vector<32x32xf32>
    %c1_15 = arith.constant 1 : index
    %c0_16 = arith.constant 0 : index
    %34 = vector.load %arg3[%c1_15, %c0_16] : memref<16x32xf32, #tpu.memory_space<vmem>>, vector<1x32xf32>
    %c5 = arith.constant 5 : index
    %c0_17 = arith.constant 0 : index
    %35 = vector.load %arg3[%c5, %c0_17] : memref<16x32xf32, #tpu.memory_space<vmem>>, vector<1x32xf32>
    %cst_18 = arith.constant dense<0.000000e+00> : vector<8x32xf32>
    %36 = tpu.matmul %31, %33, %cst_18 {dimension_numbers = #tpu.dot_dimension_numbers<[1], [0], [0], [1], [0, 0, 1, 1], [], []>} : vector<8x32xf32>, vector<32x32xf32>, vector<8x32xf32> -> vector<8x32xf32>
    %37 = arith.mulf %36, %36 : vector<8x32xf32>
    %38 = tpu.concatenate %36, %37 in 1 : vector<8x32xf32>, vector<8x32xf32> -> vector<8x64xf32>
    %cst_19 = arith.constant dense<0.000000e+00> : vector<64xf32>
    %39 = vector.multi_reduction <add>, %38, %cst_19 [0] : vector<8x64xf32> to vector<64xf32>
    %40 = vector.shape_cast %39 : vector<64xf32> to vector<1x64xf32>
    %41 = vector.extract_strided_slice %40 {offsets = [0, 0], sizes = [1, 32], strides = [1, 1]} : vector<1x64xf32> to vector<1x32xf32>
    %cst_20 = arith.constant 1.250000e-01 : f32
    %42 = vector.broadcast %cst_20 : f32 to vector<1x32xf32>
    %43 = arith.mulf %41, %42 : vector<1x32xf32>
    %44 = vector.extract_strided_slice %40 {offsets = [0, 32], sizes = [1, 32], strides = [1, 1]} : vector<1x64xf32> to vector<1x32xf32>
    %cst_21 = arith.constant 1.250000e-01 : f32
    %45 = vector.broadcast %cst_21 : f32 to vector<1x32xf32>
    %46 = arith.mulf %44, %45 : vector<1x32xf32>
    %47 = arith.mulf %43, %43 : vector<1x32xf32>
    %48 = arith.subf %46, %47 : vector<1x32xf32>
    %cst_22 = arith.constant 0.000000e+00 : f32
    %49 = vector.broadcast %cst_22 : f32 to vector<1x32xf32>
    %50 = arith.maximumf %48, %49 : vector<1x32xf32>
    %cst_23 = arith.constant 9.99999974E-6 : f32
    %51 = vector.broadcast %cst_23 : f32 to vector<1x32xf32>
    %52 = arith.addf %50, %51 : vector<1x32xf32>
    %53 = math.rsqrt %52 : vector<1x32xf32>
    %54 = arith.mulf %34, %53 : vector<1x32xf32>
    %55 = arith.mulf %43, %54 : vector<1x32xf32>
    %56 = arith.subf %35, %55 : vector<1x32xf32>
    %57 = vector.broadcast %54 : vector<1x32xf32> to vector<8x32xf32>
    %58 = arith.mulf %36, %57 : vector<8x32xf32>
    %59 = vector.broadcast %56 : vector<1x32xf32> to vector<8x32xf32>
    %60 = arith.addf %58, %59 : vector<8x32xf32>
    %cst_24 = arith.constant 0.000000e+00 : f32
    %61 = vector.broadcast %cst_24 : f32 to vector<8x32xf32>
    %62 = arith.maximumf %60, %61 : vector<8x32xf32>
    %c2 = arith.constant 2 : index
    %c0_25 = arith.constant 0 : index
    %c0_26 = arith.constant 0 : index
    %63 = vector.load %arg2[%c2, %c0_25, %c0_26] : memref<4x32x32xf32, #tpu.memory_space<vmem>>, vector<1x32x32xf32>
    %64 = vector.shape_cast %63 : vector<1x32x32xf32> to vector<32x32xf32>
    %c2_27 = arith.constant 2 : index
    %c0_28 = arith.constant 0 : index
    %65 = vector.load %arg3[%c2_27, %c0_28] : memref<16x32xf32, #tpu.memory_space<vmem>>, vector<1x32xf32>
    %c6 = arith.constant 6 : index
    %c0_29 = arith.constant 0 : index
    %66 = vector.load %arg3[%c6, %c0_29] : memref<16x32xf32, #tpu.memory_space<vmem>>, vector<1x32xf32>
    %cst_30 = arith.constant dense<0.000000e+00> : vector<8x32xf32>
    %67 = tpu.matmul %62, %64, %cst_30 {dimension_numbers = #tpu.dot_dimension_numbers<[1], [0], [0], [1], [0, 0, 1, 1], [], []>} : vector<8x32xf32>, vector<32x32xf32>, vector<8x32xf32> -> vector<8x32xf32>
    %68 = arith.mulf %67, %67 : vector<8x32xf32>
    %69 = tpu.concatenate %67, %68 in 1 : vector<8x32xf32>, vector<8x32xf32> -> vector<8x64xf32>
    %cst_31 = arith.constant dense<0.000000e+00> : vector<64xf32>
    %70 = vector.multi_reduction <add>, %69, %cst_31 [0] : vector<8x64xf32> to vector<64xf32>
    %71 = vector.shape_cast %70 : vector<64xf32> to vector<1x64xf32>
    %72 = vector.extract_strided_slice %71 {offsets = [0, 0], sizes = [1, 32], strides = [1, 1]} : vector<1x64xf32> to vector<1x32xf32>
    %cst_32 = arith.constant 1.250000e-01 : f32
    %73 = vector.broadcast %cst_32 : f32 to vector<1x32xf32>
    %74 = arith.mulf %72, %73 : vector<1x32xf32>
    %75 = vector.extract_strided_slice %71 {offsets = [0, 32], sizes = [1, 32], strides = [1, 1]} : vector<1x64xf32> to vector<1x32xf32>
    %cst_33 = arith.constant 1.250000e-01 : f32
    %76 = vector.broadcast %cst_33 : f32 to vector<1x32xf32>
    %77 = arith.mulf %75, %76 : vector<1x32xf32>
    %78 = arith.mulf %74, %74 : vector<1x32xf32>
    %79 = arith.subf %77, %78 : vector<1x32xf32>
    %cst_34 = arith.constant 0.000000e+00 : f32
    %80 = vector.broadcast %cst_34 : f32 to vector<1x32xf32>
    %81 = arith.maximumf %79, %80 : vector<1x32xf32>
    %cst_35 = arith.constant 9.99999974E-6 : f32
    %82 = vector.broadcast %cst_35 : f32 to vector<1x32xf32>
    %83 = arith.addf %81, %82 : vector<1x32xf32>
    %84 = math.rsqrt %83 : vector<1x32xf32>
    %85 = arith.mulf %65, %84 : vector<1x32xf32>
    %86 = arith.mulf %74, %85 : vector<1x32xf32>
    %87 = arith.subf %66, %86 : vector<1x32xf32>
    %88 = vector.broadcast %85 : vector<1x32xf32> to vector<8x32xf32>
    %89 = arith.mulf %67, %88 : vector<8x32xf32>
    %90 = vector.broadcast %87 : vector<1x32xf32> to vector<8x32xf32>
    %91 = arith.addf %89, %90 : vector<8x32xf32>
    %cst_36 = arith.constant 0.000000e+00 : f32
    %92 = vector.broadcast %cst_36 : f32 to vector<8x32xf32>
    %93 = arith.maximumf %91, %92 : vector<8x32xf32>
    %c3 = arith.constant 3 : index
    %c0_37 = arith.constant 0 : index
    %c0_38 = arith.constant 0 : index
    %94 = vector.load %arg2[%c3, %c0_37, %c0_38] : memref<4x32x32xf32, #tpu.memory_space<vmem>>, vector<1x32x32xf32>
    %95 = vector.shape_cast %94 : vector<1x32x32xf32> to vector<32x32xf32>
    %c3_39 = arith.constant 3 : index
    %c0_40 = arith.constant 0 : index
    %96 = vector.load %arg3[%c3_39, %c0_40] : memref<16x32xf32, #tpu.memory_space<vmem>>, vector<1x32xf32>
    %c7 = arith.constant 7 : index
    %c0_41 = arith.constant 0 : index
    %97 = vector.load %arg3[%c7, %c0_41] : memref<16x32xf32, #tpu.memory_space<vmem>>, vector<1x32xf32>
    %cst_42 = arith.constant dense<0.000000e+00> : vector<8x32xf32>
    %98 = tpu.matmul %93, %95, %cst_42 {dimension_numbers = #tpu.dot_dimension_numbers<[1], [0], [0], [1], [0, 0, 1, 1], [], []>} : vector<8x32xf32>, vector<32x32xf32>, vector<8x32xf32> -> vector<8x32xf32>
    %99 = arith.mulf %98, %98 : vector<8x32xf32>
    %100 = tpu.concatenate %98, %99 in 1 : vector<8x32xf32>, vector<8x32xf32> -> vector<8x64xf32>
    %cst_43 = arith.constant dense<0.000000e+00> : vector<64xf32>
    %101 = vector.multi_reduction <add>, %100, %cst_43 [0] : vector<8x64xf32> to vector<64xf32>
    %102 = vector.shape_cast %101 : vector<64xf32> to vector<1x64xf32>
    %103 = vector.extract_strided_slice %102 {offsets = [0, 0], sizes = [1, 32], strides = [1, 1]} : vector<1x64xf32> to vector<1x32xf32>
    %cst_44 = arith.constant 1.250000e-01 : f32
    %104 = vector.broadcast %cst_44 : f32 to vector<1x32xf32>
    %105 = arith.mulf %103, %104 : vector<1x32xf32>
    %106 = vector.extract_strided_slice %102 {offsets = [0, 32], sizes = [1, 32], strides = [1, 1]} : vector<1x64xf32> to vector<1x32xf32>
    %cst_45 = arith.constant 1.250000e-01 : f32
    %107 = vector.broadcast %cst_45 : f32 to vector<1x32xf32>
    %108 = arith.mulf %106, %107 : vector<1x32xf32>
    %109 = arith.mulf %105, %105 : vector<1x32xf32>
    %110 = arith.subf %108, %109 : vector<1x32xf32>
    %cst_46 = arith.constant 0.000000e+00 : f32
    %111 = vector.broadcast %cst_46 : f32 to vector<1x32xf32>
    %112 = arith.maximumf %110, %111 : vector<1x32xf32>
    %cst_47 = arith.constant 9.99999974E-6 : f32
    %113 = vector.broadcast %cst_47 : f32 to vector<1x32xf32>
    %114 = arith.addf %112, %113 : vector<1x32xf32>
    %115 = math.rsqrt %114 : vector<1x32xf32>
    %116 = arith.mulf %96, %115 : vector<1x32xf32>
    %117 = arith.mulf %105, %116 : vector<1x32xf32>
    %118 = arith.subf %97, %117 : vector<1x32xf32>
    %119 = vector.broadcast %116 : vector<1x32xf32> to vector<8x32xf32>
    %120 = arith.mulf %98, %119 : vector<8x32xf32>
    %121 = vector.broadcast %118 : vector<1x32xf32> to vector<8x32xf32>
    %122 = arith.addf %120, %121 : vector<8x32xf32>
    %cst_48 = arith.constant 0.000000e+00 : f32
    %123 = vector.broadcast %cst_48 : f32 to vector<8x32xf32>
    %124 = arith.maximumf %122, %123 : vector<8x32xf32>
    %c8 = arith.constant 8 : index
    %c0_49 = arith.constant 0 : index
    %125 = vector.load %arg3[%c8, %c0_49] : memref<16x32xf32, #tpu.memory_space<vmem>>, vector<1x32xf32>
    %c9 = arith.constant 9 : index
    %c0_50 = arith.constant 0 : index
    %126 = vector.load %arg3[%c9, %c0_50] : memref<16x32xf32, #tpu.memory_space<vmem>>, vector<1x1xf32>
    %127 = vector.broadcast %125 : vector<1x32xf32> to vector<8x32xf32>
    %128 = arith.mulf %124, %127 : vector<8x32xf32>
    %cst_51 = arith.constant dense<0.000000e+00> : vector<8xf32>
    %129 = vector.multi_reduction <add>, %128, %cst_51 [1] : vector<8x32xf32> to vector<8xf32>
    %130 = vector.shape_cast %129 : vector<8xf32> to vector<8x1xf32>
    %131 = vector.broadcast %126 : vector<1x1xf32> to vector<8x1xf32>
    %132 = arith.addf %130, %131 : vector<8x1xf32>
    %c0_52 = arith.constant 0 : index
    %c0_53 = arith.constant 0 : index
    %133 = vector.load %arg4[%c0_52, %c0_53] : memref<8x1xf32, #tpu.memory_space<vmem>>, vector<8x1xf32>
    tpu.vector_store %arg4[%c0_52, %c0_53], %132 {strides = array<i32>} : memref<8x1xf32, #tpu.memory_space<vmem>>, vector<8x1xf32>,
    return
  }
  func.func @transform_0(%arg0: i32) -> (i32, i32) {
    %c0_i32 = arith.constant 0 : i32
    %c0_i32_0 = arith.constant 0 : i32
    return %arg0, %c0_i32 : i32, i32
  }
  func.func @transform_1(%arg0: i32) -> (i32, i32, i32) {
    %c0_i32 = arith.constant 0 : i32
    %c0_i32_0 = arith.constant 0 : i32
    %c0_i32_1 = arith.constant 0 : i32
    %c0_i32_2 = arith.constant 0 : i32
    return %c0_i32, %c0_i32_0, %c0_i32_1 : i32, i32, i32
  }
  func.func @transform_2(%arg0: i32) -> (i32, i32) {
    %c0_i32 = arith.constant 0 : i32
    %c0_i32_0 = arith.constant 0 : i32
    %c0_i32_1 = arith.constant 0 : i32
    return %c0_i32, %c0_i32_0 : i32, i32
  }
  func.func @transform_3(%arg0: i32) -> (i32, i32) {
    %c0_i32 = arith.constant 0 : i32
    %c0_i32_0 = arith.constant 0 : i32
    return %arg0, %c0_i32 : i32, i32
  }
}

</mosaic_0001>

<bundles_post_ra>
// kernel: tpu_custom_call.1
= control target key start
LH: loop header
LB: loop body
LE: loop exit
PB: predicated region body
PF: predicated region fallthrough
CT: control target
= control target key end

     0   :  { %8 = vsyncpa [#allocation3], 0  ;;  %s1364_s0 = inlined_call_operand.hbm [shape: f32[32,32], index: 0, kind: input, shape index: {}]   ;;  %s1365_s1 = inlined_call_operand.hbm [shape: f32[4,32,32], index: 1, kind: input, shape index: {}]   ;;  %s1366_s2 = inlined_call_operand.hbm [shape: f32[16,32], index: 2, kind: input, shape index: {}]   ;;  %s1367_s3 = inlined_call_operand.vmem [shape: f32[32,1], index: 3, kind: output, shape index: {}]  }
   0x1   :  { %10 = vsyncpa [#allocation3 + $0x1], 0 }
   0x2   :  { %11 = vsyncpa [#allocation5], 0  ;;  %s1141_s12 = smov 0   ;;  %s1143_s13 = smov 0  }
   0x3   :  { %s1145_s14 = smov 0   ;;  %s1147_s15 = smov 0  }
   0x4 LB: > { %s1160_s16 = sadd.s32 4294967295, %s1109_s15   ;;  %p37_p0 = scmp.ne.s32.totalorder %s1101_s13, %s1097_s12  ;;  %s1109_s15 = sphi %s1147_s15, %s1382_s15   ;;  %s1105_s14 = sphi %s1145_s14, %s1381_s14   ;;  %s1101_s13 = sphi %s1143_s13, %s1380_s13   ;;  %s1097_s12 = sphi %s1141_s12, %s1379_s12  }
   0x5   : > { %p1368_p1 = scmp.eq.s32.totalorder %s1160_s16, 0  ;;  %p803_p2 = scmp.ge.s32.totalorder %s1109_s15, 1 }
   0x6   : > { %p116_p3 = scmp.lt.s32.totalorder %s1109_s15, 5  ;;  %s1111_s19 = smov [#allocation4]  }
   0x7   : > { %p1168_p4 = por %p1368_p1, %p37_p0  ;;  %s128_s20 = sshll.u32 %s1111_s19, 4  ;;  %s129_s20 = int_to_ptr.vmem [resolvable:$true] %s128_s20 }
   0x8   : > { %p1172_p5 = pnand %p803_p2, %p116_p3  ;;  %s1112_s22 = smov [#allocation6]  }
   0x9   : > { %s1371_s17 = scalar_select %p1168_p4, 1, 0 }
   0xa   : > { %s1372_s18 = scalar_select %p1172_p5, 1, 0 }
   0xb   : > { %p920_p6 = pneg %p1172_p5  ;;  %s141_s23 = sshll.u32 %s1112_s22, 4  ;;  %s1184_s23 = int_to_ptr.vmem [resolvable:$true] %s141_s23 }
   0xc   : > { %s985_s26 = scalar_lea.hbm %s1365_s1, 2048 }
   0xd   : > { %p1180_p7 = pnand %p920_p6, %p1368_p1  ;;  %p986_p8 = scmp.ne.s32.totalorder %s1365_s1, %s985_s26 }
   0xe   : > { %p992_p12 = scmp.lt.u32.totalorder %s985_s26, %s1365_s1 }
   0xf   : > { %p987_p9 = pneg %p1180_p7 }
  0x11   : > { %p988_p10 = pnand %p987_p9, %p986_p8 }
  0x13   : > { %p989_p11 = pneg %p988_p10 }
  0x15   : > { %p994_p13 = pnand %p992_p12, %p989_p11 }
  0x17   : > { %997 = shalt.err (!%p994_p13)
}
  0x18   : > { %s998_s4 = scalar_lea.vmem %s129_s20, 2048  ;;  %p1006_p6 = scmp.lt.s32.totalorder %s129_s20, %s129_s20 }
  0x19   : > { %p999_p0 = scmp.ne.s32.totalorder %s129_s20, %s998_s4  ;;  %p1007_p1 = scmp.lt.s32.totalorder %s998_s4, %s998_s4 }
  0x1b   : > { %p1001_p2 = pnand %p999_p0, %p987_p9  ;;  %p1008_p4 = por %p1007_p1, %p1006_p6 }
  0x1d   : > { %p1002_p3 = pneg %p1001_p2 }
  0x1f   : > { %p1009_p5 = pnand %p1008_p4, %p1002_p3 }
  0x21   : > { %1012 = shalt.err (!%p1009_p5)
}
  0x22   : > { %s1113_s5 = smov 128   ;;  %s1114_s6 = smov 8  }
  0x23   : > { %923 = dma.hbm_to_vmem [thread:$0]  (!%p1180_p7), %s1365_s1, 2048, %s129_s20, [#allocation5], %s1113_s5, %s1113_s5, %s1114_s6  }
  0x24   : > { %s1013_s11 = scalar_lea.hbm %s1366_s2, 256 }
  0x25   : > { %p1014_p8 = scmp.ne.s32.totalorder %s1366_s2, %s1013_s11  ;;  %p1020_p5 = scmp.lt.u32.totalorder %s1013_s11, %s1366_s2 }
  0x27   : > { %p1016_p1 = pnand %p1014_p8, %p987_p9 }
  0x29   : > { %p1017_p4 = pneg %p1016_p1 }
  0x2b   : > { %p1022_p10 = pnand %p1020_p5, %p1017_p4 }
  0x2d   : > { %1025 = shalt.err (!%p1022_p10)
}
  0x2e   : > { %s1026_s20 = scalar_lea.vmem %s1184_s23, 256  ;;  %p1034_p0 = scmp.lt.s32.totalorder %s1184_s23, %s1184_s23 }
  0x2f   : > { %p1027_p11 = scmp.ne.s32.totalorder %s1184_s23, %s1026_s20  ;;  %p1035_p2 = scmp.lt.s32.totalorder %s1026_s20, %s1026_s20 }
  0x31   : > { %p1029_p12 = pnand %p1027_p11, %p987_p9  ;;  %p1036_p3 = por %p1035_p2, %p1034_p0 }
  0x33   : > { %p1030_p13 = pneg %p1029_p12 }
  0x35   : > { %p1037_p6 = pnand %p1036_p3, %p1030_p13 }
  0x37   : > { %1040 = shalt.err (!%p1037_p6)
}
  0x38   : > { %926 = dma.hbm_to_vmem [thread:$0]  (!%p1180_p7), %s1366_s2, 256, %s1184_s23, [#allocation5], %s1113_s5, %s1113_s5, %s1114_s6  }
  0x39   : > { %s1234_s27 = sadd.s32 1, %s1109_s15   ;;  %s24_s28 = sadd.s32 1, %s1105_s14 }
  0x3a   : > { %s21_s21 = ssub.s32 %s1109_s15, %s1234_s27  ;;  %p31_p9 = scmp.ne.s32.totalorder %s1105_s14, %s1101_s13 }
  0x3b   : > { %p22_p8 = scmp.eq.s32.totalorder %s21_s21, 0  ;;  %p32_p1 = scmp.eq.s32.totalorder %s1109_s15, 0 }
  0x3c   : > { %p933_p4 = scmp.lt.s32.totalorder %s1109_s15, 4  ;;  %s155_s29 = sand.u32 1, %s1105_s14  }
  0x3d   : > { %s1245_s30 = scalar_select %p22_p8, %s1105_s14, %s24_s28  }
  0x3e   : > { %p33_p5 = por %p32_p1, %p31_p9  ;;  %s807_s4 = sshll.u32 %s155_s29, 3 }
  0x3f   : > { %s808_s7 = sshll.u32 %s1109_s15, 7  ;;  %s159_s23 = scalar_lea.vmem [#allocation2], %s807_s4 }
  0x40   : > { %s1251_s10 = scalar_lea.hbm %s1364_s0, %s808_s7  ;;  %s166_s5 = sshll.u32 %s159_s23, 4  ;;  %s1257_s5 = int_to_ptr.vmem [resolvable:$true] %s166_s5 }
  0x41   : > { %p1253_p7 = pnand %p933_p4, %p33_p5  ;;  %s156_s15 = scalar_lea.sflag [#allocation3], %s155_s29 }
  0x42   : > { %s1041_s11 = scalar_lea.hbm %s1251_s10, 128  ;;  %s1046_s22 = scalar_lea.hbm %s1364_s0, 512 }
  0x43   : > { %p1042_p10 = scmp.ne.s32.totalorder %s1251_s10, %s1041_s11  ;;  %p1043_p11 = pneg %p1253_p7 }
  0x44   : > { %p1047_p0 = scmp.lt.u32.totalorder %s1251_s10, %s1364_s0  ;;  %p1048_p2 = scmp.lt.u32.totalorder %s1046_s22, %s1041_s11 }
  0x45   : > { %p1044_p12 = pnand %p1043_p11, %p1042_p10  ;;  %p1050_p6 = scmp.lt.u32.totalorder %s1041_s11, %s1251_s10 }
  0x46   : > { %p1049_p3 = por %p1048_p2, %p1047_p0 }
  0x47   : > { %p1045_p13 = pneg %p1044_p12 }
  0x48   : > { %p1051_p9 = por %p1050_p6, %p1049_p3 }
  0x4a   : > { %p1052_p8 = pnand %p1051_p9, %p1045_p13 }
  0x4c   : > { %1055 = shalt.err (!%p1052_p8)
}
  0x4d   : > { %s1056_s25 = scalar_lea.vmem %s1257_s5, 128  ;;  %s1115_s26 = smov [#allocation2]  }
  0x4e   : > { %p1057_p1 = scmp.ne.s32.totalorder %s1257_s5, %s1056_s25  ;;  %s1061_s28 = sshll.u32 %s1115_s26, 4  ;;  %s1062_s28 = int_to_ptr.vmem [resolvable:$false] %s1061_s28 }
  0x4f   : > { %s1063_s21 = scalar_lea.vmem %s1062_s28, 256  ;;  %p1064_p10 = scmp.lt.s32.totalorder %s1257_s5, %s1062_s28 }
  0x50   : > { %p1059_p4 = pnand %p1057_p1, %p1043_p11  ;;  %p1065_p12 = scmp.lt.s32.totalorder %s1063_s21, %s1056_s25 }
  0x52   : > { %p1060_p5 = pneg %p1059_p4  ;;  %p1066_p0 = por %p1065_p12, %p1064_p10 }
  0x54   : > { %p1067_p2 = pnand %p1066_p0, %p1060_p5 }
  0x56   : > { %1070 = shalt.err (!%p1067_p2)
}
  0x57   : > { %930 = dma.hbm_to_vmem [thread:$0]  (!%p1253_p7), %s1251_s10, 128, %s1257_s5, %s156_s15  }
  0x58   : > { %p1375_p13 = scmp.ne.s32.totalorder %s1372_s18, 0 }
  0x59   : > { %s177_s29 = sand.u32 (!%p1375_p13), 1, %s1101_s13   ;;  %p1376_p11 = scmp.ne.s32.totalorder (!%p1375_p13), %s1371_s17, 0 }
  0x5a   : > { %175 = sbr.rel (%p1375_p13) target bundleno = 2683 (0xa7b), region = 32  ;;  %s810_s4 = sshll.u32 (!%p1375_p13), %s177_s29, 3 }
  0x5b   : > { %s178_s7 = scalar_lea.sflag (!%p1375_p13), [#allocation3], %s177_s29  ;;  %s181_s8 = scalar_lea.vmem (!%p1375_p13), [#allocation2], %s810_s4 }
  0x61   : > { %1088 = dma.done.wait (%p1376_p11), %s178_s7, 128  }
  0x62   : > { %1090 = vsyncadd (%p1376_p11), %s178_s7, 4294967168  ;;  %p1377_p3 = scmp.eq.s32.totalorder %s1160_s16, 0 }
  0x64   : > { %1092 = dma.done.wait (%p1377_p3), [#allocation5], 2304   ;;  %p1378_p6 = pmov %p1377_p3 }
  0x65   : > { %v1116_v0 = vmov 0.0|0.0   ;;  %vm1117_vm0 = vmmov 0   ;;  %v1118_v1 = vmov 0.0   ;;  %v216_v2 = vld [vmem:[#allocation4] sm:$0xff]  ;;  %v217_v3 = vld [vmem:[#allocation4 + $0x8] sm:$0xff]  ;;  %v218_v4 = vld [vmem:[#allocation4 + $0x10] sm:$0xff]  ;;  %v327_v34 = vlaneseq }
  0x66   : > { %1094 = vsyncadd (%p1378_p6), [#allocation5], 4294964992  ;;  %886 = vmatprep.subr.bf16.mxu0 %v1116_v0  ;;  %850 = vmatprep.mubr.msk.f32.mxu0 %vm1117_vm0, %v1118_v1  ;;  %v887_v5 = vpack.c.bf16 %v217_v3, %v216_v2  ;;  %v219_v6 = vld [vmem:[#allocation4 + $0x18] sm:$0xff]  ;;  %vm222_vm1 = vcmask 261120   ;;  %s1119_s17 = smov 32   ;;  %vm302_vm2 = vcmask 523264  }
  0x67   : > { %892 = vmatprep.subr.bf16.mxu1 %v1116_v0  ;;  %861 = vmatprep.mubr.msk.f32.mxu1 %vm1117_vm0, %v1118_v1  ;;  %v890_v7 = vpack.c.bf16 %v219_v6, %v218_v4  ;;  %v215_v8 = vld [vmem:[%s181_s8] sm:$0xff]  ;;  %v339_v27 = vld [vmem:[#allocation4 + $0x20] sm:$0xff]  ;;  %v340_v28 = vld [vmem:[#allocation4 + $0x28] sm:$0xff]  ;;  %s1120_s18 = smov 96   ;;  %v328_v35 = vshrl.u32 %v327_v34, 7  ;;  %p211_p7 = scmp.lt.s32.totalorder %s1160_s16, 3 }
  0x68   : > { %888 = vmatpush3.bf16.msra.mxu0 %v887_v5  ;;  %v893_v29 = vpack.c.bf16 %v340_v28, %v339_v27  ;;  %v341_v30 = vld [vmem:[#allocation4 + $0x30] sm:$0xff]  ;;  %v342_v31 = vld [vmem:[#allocation4 + $0x38] sm:$0xff]  ;;  %v220_v36 = vld [vmem:[#allocation6] sm:$0x1]  ;;  %vm716_vm3 = vcmask 7168  }
  0x69   : > { %889 = vmatprep.subr.bf16.mxu0 %v1116_v0  ;;  %v896_v32 = vpack.c.bf16 %v342_v31, %v341_v30  ;;  %v1313_v37 = vsub.s32 0, %v328_v35  ;;  %v221_v40 = vld [vmem:[#allocation6 + $0x4] sm:$0x1]  ;;  %v461_v4 = vld [vmem:[#allocation4 + $0x48] sm:$0xff]  ;;  %v462_v6 = vld [vmem:[#allocation4 + $0x50] sm:$0xff]  ;;  %s1384_s16 = smov (!%p211_p7, %s1160_s16), 3 }
  0x6a   : > { %894 = vmatpush3.bf16.msra.mxu1 %v893_v29  ;;  %v460_v3 = vld [vmem:[#allocation4 + $0x40] sm:$0xff]  ;;  %s813_s9 = sshll.u32 %s1384_s16, 3 }
  0x6b   : > { %895 = vmatprep.subr.bf16.mxu1 %v1116_v0  ;;  %v899_v5 = vpack.c.bf16 %v461_v4, %v460_v3  ;;  %s214_s5 = scalar_lea.vmem %s1367_s3, %s813_s9 }
  0x6c   : > { %891 = vmatpush3.bf16.msra.mxu0 %v890_v7  ;;  %v463_v7 = vld [vmem:[#allocation4 + $0x58] sm:$0xff] }
  0x6d   : > { %898 = vmatprep.subr.bf16.mxu0 %v1116_v0 }
  0x6e   : > { %897 = vmatpush3.bf16.msra.mxu1 %v896_v32 }
  0x6f   : > { %851 = vmatmul.mubr.msk.f32.vlgmr.msra.gmra.mrb[0].mxu0 %vm222_vm1, %v215_v8  ;;  %904 = vmatprep.subr.bf16.mxu1 %v1116_v0  ;;  %v902_v8 = vpack.c.bf16 %v463_v7, %v462_v6 }
  0x70   : > { %872 = vmatprep.mubr.msk.f32.mxu0 %vm1117_vm0, %v1118_v1  ;;  %900 = vmatpush3.bf16.msra.mxu0 %v899_v5 }
  0x71   : > { %901 = vmatprep.subr.bf16.mxu0 %v1116_v0 }
  0x74   : > { %903 = vmatpush3.bf16.msra.mxu0 %v902_v8 }
 0x142   : > { %v292_v9 = vpop.f32.mrb[0].mxu0 }
 0x143   : > { %v852_v10 = vpop.f32.mrb[1].mxu0  ;;  %v296_v11 = vmul.f32 %v292_v9, %v292_v9 }
 0x144   : > { %v343_v10 = vld [vmem:[#allocation6 + $0x1] sm:$0x1] }
 0x145   : > { %298 = vrot.lane.b32.xlu0 %v296_v11, %s1119_s17 }
 0x1b7   : > { %v299_v12 = vpop.permute.xlu0 %298 }
 0x1b8   : > { %v301_v13 = vsel %vm222_vm1, %v292_v9, %v299_v12 }
 0x1b9   : > { %v303_v14 = vsel %vm302_vm2, %v301_v13, 0.0  ;;  %v344_v13 = vld [vmem:[#allocation6 + $0x5] sm:$0x1] }
 0x1ba   : > { %v304_v15 = vrot.slane %v303_v14, 4 }
 0x1bc   : > { %v305_v16 = vadd.f32 %v304_v15, %v303_v14 }
 0x1be   : > { %v306_v17 = vrot.slane %v305_v16, 2 }
 0x1c0   : > { %v307_v18 = vadd.f32 %v306_v17, %v305_v16 }
 0x1c2   : > { %v308_v19 = vrot.slane %v307_v18, 1 }
 0x1c4   : > { %v309_v20 = vadd.f32 %v308_v19, %v307_v18 }
 0x1c6   : > { %v310_v21 = vmul.f32 0.125, %v309_v20 }
 0x1c8   : > { %v311_v22 = vmul.f32 %v310_v21, %v310_v21 }
 0x1ca   : > { %313 = vrot.lane.b32.xlu0 %v311_v22, %s1119_s17 }
 0x23c   : > { %v314_v23 = vpop.permute.xlu0 %313 }
 0x23d   : > { %v316_v24 = vsub.f32 %v310_v21, %v314_v23 }
 0x23f   : > { %v317_v25 = vmax.f32 %v316_v24, 0.0 }
 0x241   : > { %v318_v26 = vadd.f32 1e-05, %v317_v25 }
 0x243   : > { %977 = vrsqrt.f32 %v318_v26 }
 0x24d   : > { %v978_v33 = vpop.eup %977 }
 0x24e   : > { %321 = vrot.lane.b32.xlu1 %v978_v33, %s1120_s18 }
 0x2c0   : > { %v322_v38 = vpop.permute.xlu1 %321 }
 0x2c1   : > { %v324_v39 = vmul.f32 %v322_v38, %v220_v36 }
 0x2c3   : > { %v325_v41 = vmul.f32 %v324_v39, %v310_v21  ;;  %v330_v42 = vrot.slane %v324_v39, %v1313_v37 }
 0x2c5   : > { %v326_v43 = vsub.f32 %v221_v40, %v325_v41  ;;  %v331_v44 = vmul.f32 %v330_v42, %v292_v9  ;;  %v581_v40 = vld [vmem:[#allocation4 + $0x60] sm:$0xff]  ;;  %v582_v41 = vld [vmem:[#allocation4 + $0x68] sm:$0xff] }
 0x2c6   : > { %v905_v42 = vpack.c.bf16 %v582_v41, %v581_v40 }
 0x2c7   : > { %v335_v45 = vrot.slane %v326_v43, %v1313_v37  ;;  %v583_v43 = vld [vmem:[#allocation4 + $0x70] sm:$0xff] }
 0x2c9   : > { %v336_v46 = vadd.f32 %v335_v45, %v331_v44  ;;  %v584_v44 = vld [vmem:[#allocation4 + $0x78] sm:$0xff] }
 0x2ca   : > { %v908_v45 = vpack.c.bf16 %v584_v44, %v583_v43 }
 0x2cb   : > { %v337_v47 = vmax.f32 %v336_v46, 0.0 }
 0x2cd   : > { %862 = vmatmul.mubr.msk.f32.vlgmr.msra.gmra.mrb[0].mxu1 %vm222_vm1, %v337_v47  ;;  %v464_v47 = vld [vmem:[#allocation6 + $0x2] sm:$0x1] }
 0x2ce   : > { %883 = vmatprep.mubr.msk.f32.mxu1 %vm1117_vm0, %v1118_v1  ;;  %906 = vmatpush3.bf16.msra.mxu1 %v905_v42 }
 0x2cf   : > { %907 = vmatprep.subr.bf16.mxu1 %v1116_v0 }
 0x2d2   : > { %909 = vmatpush3.bf16.msra.mxu1 %v908_v45 }
 0x3a0   : > { %v414_v48 = vpop.f32.mrb[0].mxu1 }
 0x3a1   : > { %v418_v49 = vmul.f32 %v414_v48, %v414_v48  ;;  %v863_v50 = vpop.f32.mrb[1].mxu1 }
 0x3a2   : > { %v465_v50 = vld [vmem:[#allocation6 + $0x6] sm:$0x1] }
 0x3a3   : > { %420 = vrot.lane.b32.xlu1 %v418_v49, %s1119_s17 }
 0x415   : > { %v421_v51 = vpop.permute.xlu1 %420 }
 0x416   : > { %v423_v52 = vsel %vm222_vm1, %v414_v48, %v421_v51 }
 0x417   : > { %v424_v53 = vsel %vm302_vm2, %v423_v52, 0.0 }
 0x418   : > { %v425_v54 = vrot.slane %v424_v53, 4 }
 0x41a   : > { %v426_v55 = vadd.f32 %v425_v54, %v424_v53 }
 0x41c   : > { %v427_v56 = vrot.slane %v426_v55, 2 }
 0x41e   : > { %v428_v57 = vadd.f32 %v427_v56, %v426_v55 }
 0x420   : > { %v429_v58 = vrot.slane %v428_v57, 1 }
 0x422   : > { %v430_v59 = vadd.f32 %v429_v58, %v428_v57 }
 0x424   : > { %v431_v60 = vmul.f32 0.125, %v430_v59 }
 0x426   : > { %v432_v61 = vmul.f32 %v431_v60, %v431_v60 }
 0x428   : > { %434 = vrot.lane.b32.xlu0 %v432_v61, %s1119_s17 }
 0x49a   : > { %v435_v62 = vpop.permute.xlu0 %434 }
 0x49b   : > { %v437_v63 = vsub.f32 %v431_v60, %v435_v62 }
 0x49d   : > { %v438_v1 = vmax.f32 %v437_v63, 0.0 }
 0x49f   : > { %v439_v2 = vadd.f32 1e-05, %v438_v1 }
 0x4a1   : > { %979 = vrsqrt.f32 %v439_v2 }
 0x4ab   : > { %v980_v9 = vpop.eup %979 }
 0x4ac   : > { %442 = vrot.lane.b32.xlu1 %v980_v9, %s1120_s18 }
 0x51e   : > { %v443_v11 = vpop.permute.xlu1 %442 }
 0x51f   : > { %v445_v12 = vmul.f32 %v443_v11, %v343_v10 }
 0x521   : > { %v446_v14 = vmul.f32 %v445_v12, %v431_v60  ;;  %v451_v15 = vrot.slane %v445_v12, %v1313_v37 }
 0x523   : > { %v447_v16 = vsub.f32 %v344_v13, %v446_v14  ;;  %v452_v17 = vmul.f32 %v451_v15, %v414_v48  ;;  %v585_v13 = vld [vmem:[#allocation6 + $0x3] sm:$0x1] }
 0x525   : > { %v456_v18 = vrot.slane %v447_v16, %v1313_v37  ;;  %v586_v16 = vld [vmem:[#allocation6 + $0x7] sm:$0x1] }
 0x527   : > { %v457_v19 = vadd.f32 %v456_v18, %v452_v17 }
 0x529   : > { %v458_v20 = vmax.f32 %v457_v19, 0.0 }
 0x52b   : > { %873 = vmatmul.mubr.msk.f32.vlgmr.msra.gmra.mrb[2].mxu0 %vm222_vm1, %v458_v20 }
 0x5fe   : > { %v535_v21 = vpop.f32.mrb[2].mxu0 }
 0x5ff   : > { %v539_v22 = vmul.f32 %v535_v21, %v535_v21  ;;  %v874_v23 = vpop.f32.mrb[3].mxu0 }
 0x600   : > { %v818_v23 = vld [vmem:[#allocation6 + $0x8] ss:$0 sm:$0xff] }
 0x601   : > { %541 = vrot.lane.b32.xlu0 %v539_v22, %s1119_s17 }
 0x673   : > { %v542_v24 = vpop.permute.xlu0 %541 }
 0x674   : > { %v544_v25 = vsel %vm222_vm1, %v535_v21, %v542_v24 }
 0x675   : > { %v545_v26 = vsel %vm302_vm2, %v544_v25, 0.0 }
 0x676   : > { %v546_v27 = vrot.slane %v545_v26, 4 }
 0x678   : > { %v547_v28 = vadd.f32 %v546_v27, %v545_v26  ;;  %v819_v27 = vld [vmem:[#allocation6 + $0x9] ss:$0 sm:$0xff] }
 0x67a   : > { %v548_v29 = vrot.slane %v547_v28, 2 }
 0x67c   : > { %v549_v30 = vadd.f32 %v548_v29, %v547_v28 }
 0x67e   : > { %v550_v31 = vrot.slane %v549_v30, 1 }
 0x680   : > { %v551_v32 = vadd.f32 %v550_v31, %v549_v30 }
 0x682   : > { %v552_v33 = vmul.f32 0.125, %v551_v32 }
 0x684   : > { %v553_v34 = vmul.f32 %v552_v33, %v552_v33 }
 0x686   : > { %555 = vrot.lane.b32.xlu1 %v553_v34, %s1119_s17 }
 0x6f8   : > { %v556_v35 = vpop.permute.xlu1 %555 }
 0x6f9   : > { %v558_v36 = vsub.f32 %v552_v33, %v556_v35 }
 0x6fb   : > { %v559_v38 = vmax.f32 %v558_v36, 0.0 }
 0x6fd   : > { %v560_v39 = vadd.f32 1e-05, %v559_v38 }
 0x6ff   : > { %981 = vrsqrt.f32 %v560_v39 }
 0x709   : > { %v982_v46 = vpop.eup %981 }
 0x70a   : > { %563 = vrot.lane.b32.xlu0 %v982_v46, %s1120_s18 }
 0x77c   : > { %v564_v48 = vpop.permute.xlu0 %563 }
 0x77d   : > { %v566_v49 = vmul.f32 %v564_v48, %v464_v47 }
 0x77f   : > { %v567_v51 = vmul.f32 %v566_v49, %v552_v33  ;;  %v572_v52 = vrot.slane %v566_v49, %v1313_v37 }
 0x781   : > { %v568_v53 = vsub.f32 %v465_v50, %v567_v51  ;;  %v573_v54 = vmul.f32 %v572_v52, %v535_v21 }
 0x783   : > { %v577_v55 = vrot.slane %v568_v53, %v1313_v37 }
 0x785   : > { %v578_v56 = vadd.f32 %v577_v55, %v573_v54 }
 0x787   : > { %v579_v0 = vmax.f32 %v578_v56, 0.0 }
 0x789   : > { %884 = vmatmul.mubr.msk.f32.vlgmr.msra.gmra.mrb[2].mxu1 %vm222_vm1, %v579_v0 }
 0x85c   : > { %v656_v57 = vpop.f32.mrb[2].mxu1 }
 0x85d   : > { %v660_v58 = vmul.f32 %v656_v57, %v656_v57  ;;  %v885_v59 = vpop.f32.mrb[3].mxu1 }
 0x85f   : > { %662 = vrot.lane.b32.xlu1 %v660_v58, %s1119_s17 }
 0x8d1   : > { %v663_v60 = vpop.permute.xlu1 %662 }
 0x8d2   : > { %v665_v61 = vsel %vm222_vm1, %v656_v57, %v663_v60 }
 0x8d3   : > { %v666_v62 = vsel %vm302_vm2, %v665_v61, 0.0 }
 0x8d4   : > { %v667_v63 = vrot.slane %v666_v62, 4 }
 0x8d6   : > { %v668_v1 = vadd.f32 %v667_v63, %v666_v62 }
 0x8d8   : > { %v669_v2 = vrot.slane %v668_v1, 2 }
 0x8da   : > { %v670_v3 = vadd.f32 %v669_v2, %v668_v1 }
 0x8dc   : > { %v671_v4 = vrot.slane %v670_v3, 1 }
 0x8de   : > { %v672_v5 = vadd.f32 %v671_v4, %v670_v3 }
 0x8e0   : > { %v673_v6 = vmul.f32 0.125, %v672_v5 }
 0x8e2   : > { %v674_v7 = vmul.f32 %v673_v6, %v673_v6 }
 0x8e4   : > { %676 = vrot.lane.b32.xlu0 %v674_v7, %s1119_s17 }
 0x956   : > { %v677_v8 = vpop.permute.xlu0 %676 }
 0x957   : > { %v679_v9 = vsub.f32 %v673_v6, %v677_v8 }
 0x959   : > { %v680_v10 = vmax.f32 %v679_v9, 0.0 }
 0x95b   : > { %v681_v11 = vadd.f32 1e-05, %v680_v10 }
 0x95d   : > { %983 = vrsqrt.f32 %v681_v11 }
 0x967   : > { %v984_v12 = vpop.eup %983 }
 0x968   : > { %684 = vrot.lane.b32.xlu1 %v984_v12, %s1120_s18 }
 0x9da   : > { %v685_v14 = vpop.permute.xlu1 %684 }
 0x9db   : > { %v687_v15 = vmul.f32 %v685_v14, %v585_v13 }
 0x9dd   : > { %v688_v17 = vmul.f32 %v687_v15, %v673_v6  ;;  %v693_v18 = vrot.slane %v687_v15, %v1313_v37 }
 0x9df   : > { %v689_v19 = vsub.f32 %v586_v16, %v688_v17  ;;  %v694_v20 = vmul.f32 %v693_v18, %v656_v57 }
 0x9e1   : > { %v698_v21 = vrot.slane %v689_v19, %v1313_v37 }
 0x9e3   : > { %v699_v22 = vadd.f32 %v698_v21, %v694_v20 }
 0x9e5   : > { %v700_v24 = vmax.f32 %v699_v22, 0.0 }
 0x9e7   : > { %v707_v25 = vmul.f32 %v818_v23, %v700_v24 }
 0x9e9   : > { %v708_v26 = vsel %vm222_vm1, %v707_v25, 0.0 }
 0x9ea   : > { %709 = vadd.xlane.f32.xlu0 %v708_v26 }
 0xa77   : > { %v710_v28 = vpop.xlane.xlu0 %709 }
 0xa78   : > { %v715_v29 = vadd.f32 %v819_v27, %v710_v28 }
 0xa7a   : > { %717 = vst.msk [vmem:[%s214_s5] sm:$0xff] %vm716_vm3, %v715_v29 }
 0xa7b PF: > { %p14_p9 = scmp.ge.s32.totalorder %s1234_s27, 6   ;;  %s1379_s12 = smov %s1101_s13 }
 0xa7c   : > { %s1380_s13 = smov %s1105_s14  ;;  %s1381_s14 = smov %s1245_s30 }
 0xa7d   : > { %s1382_s15 = smov %s1234_s27  ;;  %16 = sbr.rel (!%p14_p9) target bundleno = 4 (0x4), region = 83 }
 0xa84   :  { %737 = vsyncpa [#allocation3], 1 }
 0xa85   :  { %739 = vsyncpa [#allocation3 + $0x1], 1 }
 0xa86   :  { %740 = vsyncpa [#allocation5], 1 }

</bundles_post_ra>
